<compile_context>
chip_gen: v6e
topology: v6e:2x2x1
jax: 0.10.0
libtpu: 0.0.40
codegen_flags: <defaults>
</compile_context>

<pallas_src>
import functools

import jax
import jax.numpy as jnp
from jax.experimental import pallas as pl
from jax.experimental.pallas import tpu as pltpu

EPS = 1e-5
K = 5      # Conv1d kernel size
PAD = 2    # Conv1d padding


# ------------------------------ kernel helpers ------------------------------
def _im2col_block(xblk, length):
    """xblk: (B_tile, C, L) already in compute dtype -> (K*C, B_tile*L) slab.

    Zero padding along L happens here (in-kernel, no HBM round trip); the
    per-batch-element slabs are stacked along the lane axis so the conv is a
    single MXU matmul per grid step."""
    bsz, c, _ = xblk.shape
    zpad = jnp.zeros((c, PAD), xblk.dtype)                       # hoisted constant
    cols = []
    for b in range(bsz):                                         # static loop
        xp = jnp.concatenate([zpad, xblk[b], zpad], axis=1)      # (C, L+4)
        cols.append(jnp.concatenate([xp[:, k:k + length] for k in range(K)],
                                    axis=0))                     # (K*C, L)
    return jnp.concatenate(cols, axis=1)                         # (K*C, B*L)


def _lane_dense_stats(stats, cout):
    """List of (cout,) f32 sums -> (nstats, cout) lane-dense block."""
    return jnp.concatenate([s.reshape(1, cout) for s in stats], axis=0)


# --------------------------------- kernels ----------------------------------
def _conv1_kernel(has_ds, *refs):
    """Pass 1: conv1 (and downsample conv) for B_tile batch elems + BN partials."""
    if has_ds:
        x_ref, w1_ref, wd_ref, y1_ref, yd_ref, ps_ref = refs
    else:
        x_ref, w1_ref, y1_ref, ps_ref = refs
    bsz, _, length = x_ref.shape
    cdt = w1_ref.dtype
    cout = w1_ref.shape[0]

    col = _im2col_block(x_ref[...].astype(cdt), length)          # (K*Cin, B*L) bf16

    y1 = jnp.dot(w1_ref[...], col, preferred_element_type=jnp.float32)  # (Cout, B*L)
    stats = [jnp.sum(y1, axis=1), jnp.sum(y1 * y1, axis=1)]      # f32, pre-downcast
    y1_bf = y1.astype(y1_ref.dtype)
    for b in range(bsz):
        y1_ref[b] = y1_bf[:, b * length:(b + 1) * length]

    if has_ds:
        yd = jnp.dot(wd_ref[...], col, preferred_element_type=jnp.float32)
        stats += [jnp.sum(yd, axis=1), jnp.sum(yd * yd, axis=1)]
        yd_bf = yd.astype(yd_ref.dtype)
        for b in range(bsz):
            yd_ref[b] = yd_bf[:, b * length:(b + 1) * length]

    ps_ref[0] = _lane_dense_stats(stats, cout)                   # (nstats, Cout)


def _conv2_kernel(y1_ref, a1_ref, c1_ref, w2_ref, y2_ref, ps_ref):
    """Pass 2: bn1-apply (f32) + ReLU, then conv2 + BN partial sums."""
    bsz, cout, length = y1_ref.shape
    cdt = w2_ref.dtype

    # BN apply in f32 on the bf16-stored conv1 output, single cast to bf16.
    h = jnp.maximum(y1_ref[...].astype(jnp.float32) * a1_ref[...] + c1_ref[...],
                    0.0)                                          # (B, Cout, L) f32
    col = _im2col_block(h.astype(cdt), length)                    # (K*Cout, B*L)

    y2 = jnp.dot(w2_ref[...], col, preferred_element_type=jnp.float32)
    stats = [jnp.sum(y2, axis=1), jnp.sum(y2 * y2, axis=1)]
    y2_bf = y2.astype(y2_ref.dtype)
    for b in range(bsz):
        y2_ref[b] = y2_bf[:, b * length:(b + 1) * length]
    ps_ref[0] = _lane_dense_stats(stats, cout)


def _finalize_kernel(has_ds, *refs):
    """Pass 3: bn2-apply, residual (bn_d-apply or identity), add, ReLU."""
    if has_ds:
        y2_ref, r_ref, a2_ref, c2_ref, ad_ref, cd_ref, out_ref = refs
        res = r_ref[...].astype(jnp.float32) * ad_ref[...] + cd_ref[...]
    else:
        y2_ref, r_ref, a2_ref, c2_ref, out_ref = refs
        res = r_ref[...]                                          # identity, f32
    y2 = y2_ref[...].astype(jnp.float32)
    out_ref[...] = jnp.maximum(y2 * a2_ref[...] + c2_ref[...] + res, 0.0)


# --------------------------------- wrapper -----------------------------------
def _bn_affine(tot_sum, tot_sq, gamma, beta, cnt):
    """Fold train-mode BN (batch mean / biased var) into per-channel scale+shift."""
    mean = tot_sum / cnt
    var = tot_sq / cnt - mean * mean
    scale = gamma.astype(jnp.float32) * jax.lax.rsqrt(var + EPS)
    shift = beta.astype(jnp.float32) - mean * scale
    return scale.reshape(-1, 1), shift.reshape(-1, 1)            # (Cout, 1)


def _pick_b_tile(n, cin, cout, length, nconv, budget_bytes=8 * 1024 * 1024):
    """Largest batch tile that divides n and keeps the per-step working set small
    enough for every TPU generation (conservative; v7x has 64 MiB VMEM)."""
    per_b = (2 * cin * length * 2                    # double-buffered bf16 input
             + 2 * nconv * cout * length * 2         # double-buffered bf16 outputs
             + K * max(cin, cout) * length * 2       # bf16 im2col slab
             + (nconv + 1) * cout * length * 4)      # f32 MXU results / temporaries
    for bt in (8, 4, 2):
        if n % bt == 0 and bt * per_b <= budget_bytes:
            return bt
    return 1


def residual_block(x_ncl, params, *, compute_dtype=jnp.bfloat16):
    """x_ncl: (N, C_in, L) (PyTorch NCL). params hold PyTorch-layout tensors:
    w1 (C_out, C_in, K), w2 (C_out, C_out, K), g1/b1/g2/b2 (C_out,), and when
    C_in != C_out also wd (C_out, C_in, K), gd/bd (C_out,). Returns (N, C_out, L)."""
    n, cin, length = x_ncl.shape
    cout = params["w1"].shape[0]
    has_ds = cin != cout
    nconv = 2 if has_ds else 1
    cnt = float(n * length)
    wbytes = jnp.dtype(compute_dtype).itemsize
    abytes = jnp.dtype(compute_dtype).itemsize          # activation stream bytes

    # Pass-1 input stream is bf16 (it feeds the MXU anyway); keep an f32 copy
    # only for the identity-residual read in pass 3.
    x_cd = x_ncl.astype(compute_dtype)
    x_f32 = None if has_ds else x_ncl.astype(jnp.float32)

    def wmat(w):      # (C_out, C, K) -> (C_out, K*C), row index = k*C + c
        o, c, k = w.shape
        return jnp.transpose(w, (0, 2, 1)).reshape(o, k * c).astype(compute_dtype)

    w1m = wmat(params["w1"])
    w2m = wmat(params["w2"])
    wdm = wmat(params["wd"]) if has_ds else None

    b_tile = _pick_b_tile(n, cin, cout, length, nconv)
    steps = n // b_tile

    cparams = pltpu.CompilerParams(
        dimension_semantics=("parallel",),            # megacore sharding on v7x
        vmem_limit_bytes=48 * 1024 * 1024)

    act_in_spec = pl.BlockSpec((b_tile, cin, length), lambda i: (i, 0, 0))
    act_spec = pl.BlockSpec((b_tile, cout, length), lambda i: (i, 0, 0))
    vec_spec = pl.BlockSpec((cout, 1), lambda i: (0, 0))

    # -------- pass 1: conv1 (+ downsample conv) + BN partial sums --------
    nstats = 4 if has_ds else 2
    ps_spec1 = pl.BlockSpec((1, nstats, cout), lambda i: (i, 0, 0))
    in_specs1 = [act_in_spec, pl.BlockSpec((cout, K * cin), lambda i: (0, 0))]
    inputs1 = [x_cd, w1m]
    if has_ds:
        in_specs1.append(pl.BlockSpec((cout, K * cin), lambda i: (0, 0)))
        inputs1.append(wdm)
    out_shape1 = [jax.ShapeDtypeStruct((n, cout, length), compute_dtype)] * nconv \
                 + [jax.ShapeDtypeStruct((steps, nstats, cout), jnp.float32)]
    out_specs1 = [act_spec] * nconv + [ps_spec1]
    cost1 = pl.CostEstimate(
        flops=2 * n * length * K * cin * cout * nconv,
        transcendentals=0,
        bytes_accessed=abytes * (n * cin * length + nconv * n * cout * length)
                       + 4 * steps * nstats * cout
                       + wbytes * nconv * cout * K * cin)
    res1 = pl.pallas_call(
        functools.partial(_conv1_kernel, has_ds),
        grid=(steps,),
        in_specs=in_specs1,
        out_specs=out_specs1,
        out_shape=out_shape1,
        compiler_params=cparams,
        cost_estimate=cost1,
    )(*inputs1)
    if has_ds:
        y1, yd, ps1 = res1
    else:
        y1, ps1 = res1

    tot1 = jnp.sum(ps1, axis=0)                                   # (nstats, Cout)
    a1, c1 = _bn_affine(tot1[0], tot1[1], params["g1"], params["b1"], cnt)
    if has_ds:
        ad, cd = _bn_affine(tot1[2], tot1[3], params["gd"], params["bd"], cnt)

    # -------- pass 2: bn1-apply + ReLU + conv2 + BN partial sums --------
    ps_spec2 = pl.BlockSpec((1, 2, cout), lambda i: (i, 0, 0))
    cost2 = pl.CostEstimate(
        flops=2 * n * length * K * cout * cout + 4 * n * cout * length,
        transcendentals=0,
        bytes_accessed=abytes * 2 * n * cout * length
                       + 4 * (steps * 2 * cout + 4 * cout)
                       + wbytes * cout * K * cout)
    y2, ps2 = pl.pallas_call(
        _conv2_kernel,
        grid=(steps,),
        in_specs=[act_spec, vec_spec, vec_spec,
                  pl.BlockSpec((cout, K * cout), lambda i: (0, 0))],
        out_specs=[act_spec, ps_spec2],
        out_shape=[jax.ShapeDtypeStruct((n, cout, length), compute_dtype),
                   jax.ShapeDtypeStruct((steps, 2, cout), jnp.float32)],
        compiler_params=cparams,
        cost_estimate=cost2,
    )(y1, a1, c1, w2m)

    tot2 = jnp.sum(ps2, axis=0)
    a2, c2 = _bn_affine(tot2[0], tot2[1], params["g2"], params["b2"], cnt)

    # -------- pass 3: bn2-apply + residual branch + add + ReLU --------
    residual = yd if has_ds else x_f32
    rbytes = abytes if has_ds else 4
    ins3 = [y2, residual, a2, c2] + ([ad, cd] if has_ds else [])
    in_specs3 = [act_spec, act_spec, vec_spec, vec_spec] + \
                ([vec_spec, vec_spec] if has_ds else [])
    cost3 = pl.CostEstimate(
        flops=6 * n * cout * length, transcendentals=0,
        bytes_accessed=(abytes + rbytes + 4) * n * cout * length + 4 * 8 * cout)
    out = pl.pallas_call(
        functools.partial(_finalize_kernel, has_ds),
        grid=(steps,),
        in_specs=in_specs3,
        out_specs=act_spec,
        out_shape=jax.ShapeDtypeStruct((n, cout, length), jnp.float32),
        compiler_params=cparams,
        cost_estimate=cost3,
    )(*ins3)
    return out


# ----------------------------- pure-JAX reference -----------------------------
def _ref_conv1d(x_ncl, w_ock):
    n, _, length = x_ncl.shape
    xp = jnp.pad(x_ncl, ((0, 0), (0, 0), (PAD, PAD)))
    out = jnp.zeros((n, w_ock.shape[0], length), jnp.float32)
    for k in range(K):
        out = out + jnp.einsum("ncl,oc->nol", xp[:, :, k:k + length], w_ock[:, :, k],
                               precision="highest")
    return out


def _ref_bn(y_ncl, gamma, beta):
    m = y_ncl.mean(axis=(0, 2), keepdims=True)
    v = ((y_ncl - m) ** 2).mean(axis=(0, 2), keepdims=True)
    return (y_ncl - m) * jax.lax.rsqrt(v + EPS) * gamma.reshape(1, -1, 1) \
           + beta.reshape(1, -1, 1)


def _ref_block(x_ncl, p):
    x = x_ncl.astype(jnp.float32)
    h = jax.nn.relu(_ref_bn(_ref_conv1d(x, p["w1"]), p["g1"], p["b1"]))
    h = _ref_bn(_ref_conv1d(h, p["w2"]), p["g2"], p["b2"])
    if "wd" in p:
        r = _ref_bn(_ref_conv1d(x, p["wd"]), p["gd"], p["bd"])
    else:
        r = x
    return jax.nn.relu(h + r)


if __name__ == "__main__":
    configs = [
        (2, 4, 8, 128),   # in_channels != out_channels -> downsample path, lane-dense
        (2, 8, 8, 16),    # in_channels == out_channels -> identity residual path
    ]
    for (n, cin, cout, length) in configs:
        keys = jax.random.split(jax.random.PRNGKey(0), 10)
        x = jax.random.normal(keys[0], (n, cin, length), jnp.float32)
        params = dict(
            # PyTorch Conv1d weight layout: (C_out, C_in, K)
            w1=0.1 * jax.random.normal(keys[1], (cout, cin, K), jnp.float32),
            w2=0.1 * jax.random.normal(keys[2], (cout, cout, K), jnp.float32),
            g1=1.0 + 0.1 * jax.random.normal(keys[3], (cout,), jnp.float32),
            b1=0.1 * jax.random.normal(keys[4], (cout,), jnp.float32),
            g2=1.0 + 0.1 * jax.random.normal(keys[5], (cout,), jnp.float32),
            b2=0.1 * jax.random.normal(keys[6], (cout,), jnp.float32),
        )
        if cin != cout:
            params.update(
                wd=0.1 * jax.random.normal(keys[7], (cout, cin, K), jnp.float32),
                gd=1.0 + 0.1 * jax.random.normal(keys[8], (cout,), jnp.float32),
                bd=0.1 * jax.random.normal(keys[9], (cout,), jnp.float32),
            )

        out = jax.block_until_ready(jax.jit(residual_block)(x, params))
        ref = _ref_block(x, params)

        assert out.shape == (n, cout, length), out.shape
        err = float(jnp.max(jnp.abs(out - ref)))
        # bf16 MXU operands + bf16 inter-pass activation streams (BN stats,
        # normalization and identity residual in f32) vs. a full-f32
        # "highest"-precision reference.
        assert err < 7.5e-2, f"config {(n, cin, cout, length)}: max abs err {err}"
    print("KERNEL_OK")
</pallas_src>

<mosaic_0001>
module attributes {stable_mosaic.version = 11 : i64} {
  func.func @_finalize_kernel(%arg0: i32, %arg1: memref<2x8x128xbf16, #tpu.memory_space<vmem>>, %arg2: memref<2x8x128xbf16, #tpu.memory_space<vmem>>, %arg3: memref<8x1xf32, #tpu.memory_space<vmem>>, %arg4: memref<8x1xf32, #tpu.memory_space<vmem>>, %arg5: memref<8x1xf32, #tpu.memory_space<vmem>>, %arg6: memref<8x1xf32, #tpu.memory_space<vmem>>, %arg7: memref<2x8x128xf32, #tpu.memory_space<vmem>>) attributes {dimension_semantics = [#tpu.dimension_semantics<parallel>], iteration_bounds = array<i64: 1>, scalar_prefetch = 0 : i64, scratch_operands = 0 : i64, tpu.core_type = #tpu.core_type<tc>, window_params = [{transform_indices = @transform_0, window_bounds = array<i64: 2, 8, 128>}, {transform_indices = @transform_1, window_bounds = array<i64: 2, 8, 128>}, {pipeline_mode = #tpu.pipeline_mode<synchronous>, transform_indices = @transform_2, window_bounds = array<i64: 8, 1>}, {pipeline_mode = #tpu.pipeline_mode<synchronous>, transform_indices = @transform_3, window_bounds = array<i64: 8, 1>}, {pipeline_mode = #tpu.pipeline_mode<synchronous>, transform_indices = @transform_4, window_bounds = array<i64: 8, 1>}, {pipeline_mode = #tpu.pipeline_mode<synchronous>, transform_indices = @transform_5, window_bounds = array<i64: 8, 1>}, {transform_indices = @transform_6, window_bounds = array<i64: 2, 8, 128>}]} {
    %c0 = arith.constant 0 : index
    %c0_0 = arith.constant 0 : index
    %c0_1 = arith.constant 0 : index
    %0 = vector.load %arg2[%c0, %c0_0, %c0_1] : memref<2x8x128xbf16, #tpu.memory_space<vmem>>, vector<2x8x128xbf16>
    %1 = arith.extf %0 : vector<2x8x128xbf16> to vector<2x8x128xf32>
    %c0_2 = arith.constant 0 : index
    %c0_3 = arith.constant 0 : index
    %2 = vector.load %arg5[%c0_2, %c0_3] : memref<8x1xf32, #tpu.memory_space<vmem>>, vector<8x1xf32>
    %3 = vector.shape_cast %2 : vector<8x1xf32> to vector<1x8x1xf32>
    %4 = vector.broadcast %3 : vector<1x8x1xf32> to vector<2x8x128xf32>
    %5 = arith.mulf %1, %4 : vector<2x8x128xf32>
    %c0_4 = arith.constant 0 : index
    %c0_5 = arith.constant 0 : index
    %6 = vector.load %arg6[%c0_4, %c0_5] : memref<8x1xf32, #tpu.memory_space<vmem>>, vector<8x1xf32>
    %7 = vector.shape_cast %6 : vector<8x1xf32> to vector<1x8x1xf32>
    %8 = vector.broadcast %7 : vector<1x8x1xf32> to vector<2x8x128xf32>
    %9 = arith.addf %5, %8 : vector<2x8x128xf32>
    %c0_6 = arith.constant 0 : index
    %c0_7 = arith.constant 0 : index
    %c0_8 = arith.constant 0 : index
    %10 = vector.load %arg1[%c0_6, %c0_7, %c0_8] : memref<2x8x128xbf16, #tpu.memory_space<vmem>>, vector<2x8x128xbf16>
    %11 = arith.extf %10 : vector<2x8x128xbf16> to vector<2x8x128xf32>
    %c0_9 = arith.constant 0 : index
    %c0_10 = arith.constant 0 : index
    %12 = vector.load %arg3[%c0_9, %c0_10] : memref<8x1xf32, #tpu.memory_space<vmem>>, vector<8x1xf32>
    %13 = vector.shape_cast %12 : vector<8x1xf32> to vector<1x8x1xf32>
    %14 = vector.broadcast %13 : vector<1x8x1xf32> to vector<2x8x128xf32>
    %15 = arith.mulf %11, %14 : vector<2x8x128xf32>
    %c0_11 = arith.constant 0 : index
    %c0_12 = arith.constant 0 : index
    %16 = vector.load %arg4[%c0_11, %c0_12] : memref<8x1xf32, #tpu.memory_space<vmem>>, vector<8x1xf32>
    %17 = vector.shape_cast %16 : vector<8x1xf32> to vector<1x8x1xf32>
    %18 = vector.broadcast %17 : vector<1x8x1xf32> to vector<2x8x128xf32>
    %19 = arith.addf %15, %18 : vector<2x8x128xf32>
    %20 = arith.addf %19, %9 : vector<2x8x128xf32>
    %cst = arith.constant 0.000000e+00 : f32
    %21 = vector.broadcast %cst : f32 to vector<2x8x128xf32>
    %22 = arith.maximumf %20, %21 : vector<2x8x128xf32>
    %c0_13 = arith.constant 0 : index
    %c0_14 = arith.constant 0 : index
    %c0_15 = arith.constant 0 : index
    %23 = vector.load %arg7[%c0_13, %c0_14, %c0_15] : memref<2x8x128xf32, #tpu.memory_space<vmem>>, vector<2x8x128xf32>
    tpu.vector_store %arg7[%c0_13, %c0_14, %c0_15], %22 {strides = array<i32>} : memref<2x8x128xf32, #tpu.memory_space<vmem>>, vector<2x8x128xf32>,
    return
  }
  func.func @transform_0(%arg0: i32) -> (i32, i32, i32) {
    %c0_i32 = arith.constant 0 : i32
    %c0_i32_0 = arith.constant 0 : i32
    %c0_i32_1 = arith.constant 0 : i32
    return %arg0, %c0_i32, %c0_i32_0 : i32, i32, i32
  }
  func.func @transform_1(%arg0: i32) -> (i32, i32, i32) {
    %c0_i32 = arith.constant 0 : i32
    %c0_i32_0 = arith.constant 0 : i32
    %c0_i32_1 = arith.constant 0 : i32
    return %arg0, %c0_i32, %c0_i32_0 : i32, i32, i32
  }
  func.func @transform_2(%arg0: i32) -> (i32, i32) {
    %c0_i32 = arith.constant 0 : i32
    %c0_i32_0 = arith.constant 0 : i32
    %c0_i32_1 = arith.constant 0 : i32
    return %c0_i32, %c0_i32_0 : i32, i32
  }
  func.func @transform_3(%arg0: i32) -> (i32, i32) {
    %c0_i32 = arith.constant 0 : i32
    %c0_i32_0 = arith.constant 0 : i32
    %c0_i32_1 = arith.constant 0 : i32
    return %c0_i32, %c0_i32_0 : i32, i32
  }
  func.func @transform_4(%arg0: i32) -> (i32, i32) {
    %c0_i32 = arith.constant 0 : i32
    %c0_i32_0 = arith.constant 0 : i32
    %c0_i32_1 = arith.constant 0 : i32
    return %c0_i32, %c0_i32_0 : i32, i32
  }
  func.func @transform_5(%arg0: i32) -> (i32, i32) {
    %c0_i32 = arith.constant 0 : i32
    %c0_i32_0 = arith.constant 0 : i32
    %c0_i32_1 = arith.constant 0 : i32
    return %c0_i32, %c0_i32_0 : i32, i32
  }
  func.func @transform_6(%arg0: i32) -> (i32, i32, i32) {
    %c0_i32 = arith.constant 0 : i32
    %c0_i32_0 = arith.constant 0 : i32
    %c0_i32_1 = arith.constant 0 : i32
    return %arg0, %c0_i32, %c0_i32_0 : i32, i32, i32
  }
}

module attributes {stable_mosaic.version = 11 : i64} {
  func.func @_conv1_kernel(%arg0: i32, %arg1: memref<2x4x128xbf16, #tpu.memory_space<vmem>>, %arg2: memref<8x20xbf16, #tpu.memory_space<vmem>>, %arg3: memref<8x20xbf16, #tpu.memory_space<vmem>>, %arg4: memref<2x8x128xbf16, #tpu.memory_space<vmem>>, %arg5: memref<2x8x128xbf16, #tpu.memory_space<vmem>>, %arg6: memref<1x4x8xf32, #tpu.memory_space<vmem>>) attributes {dimension_semantics = [#tpu.dimension_semantics<parallel>], iteration_bounds = array<i64: 1>, scalar_prefetch = 0 : i64, scratch_operands = 0 : i64, tpu.core_type = #tpu.core_type<tc>, window_params = [{transform_indices = @transform_0, window_bounds = array<i64: 2, 4, 128>}, {pipeline_mode = #tpu.pipeline_mode<synchronous>, transform_indices = @transform_1, window_bounds = array<i64: 8, 20>}, {pipeline_mode = #tpu.pipeline_mode<synchronous>, transform_indices = @transform_2, window_bounds = array<i64: 8, 20>}, {transform_indices = @transform_3, window_bounds = array<i64: 2, 8, 128>}, {transform_indices = @transform_4, window_bounds = array<i64: 2, 8, 128>}, {transform_indices = @transform_5, window_bounds = array<i64: 1, 4, 8>}]} {
    %c0 = arith.constant 0 : index
    %c0_0 = arith.constant 0 : index
    %c0_1 = arith.constant 0 : index
    %0 = vector.load %arg1[%c0, %c0_0, %c0_1] : memref<2x4x128xbf16, #tpu.memory_space<vmem>>, vector<2x4x128xbf16>
    %cst = arith.constant 0.000000e+00 : bf16
    %1 = vector.broadcast %cst : bf16 to vector<4x2xbf16>
    %2 = vector.extract_strided_slice %0 {offsets = [0, 0, 0], sizes = [1, 4, 128], strides = [1, 1, 1]} : vector<2x4x128xbf16> to vector<1x4x128xbf16>
    %3 = vector.shape_cast %2 : vector<1x4x128xbf16> to vector<4x128xbf16>
    %4 = tpu.concatenate %1, %3, %1 in 1 : vector<4x2xbf16>, vector<4x128xbf16>, vector<4x2xbf16> -> vector<4x132xbf16>
    %5 = vector.extract_strided_slice %4 {offsets = [0, 0], sizes = [4, 128], strides = [1, 1]} : vector<4x132xbf16> to vector<4x128xbf16>
    %6 = vector.extract_strided_slice %4 {offsets = [0, 1], sizes = [4, 128], strides = [1, 1]} : vector<4x132xbf16> to vector<4x128xbf16>
    %7 = vector.extract_strided_slice %4 {offsets = [0, 2], sizes = [4, 128], strides = [1, 1]} : vector<4x132xbf16> to vector<4x128xbf16>
    %8 = vector.extract_strided_slice %4 {offsets = [0, 3], sizes = [4, 128], strides = [1, 1]} : vector<4x132xbf16> to vector<4x128xbf16>
    %9 = vector.extract_strided_slice %4 {offsets = [0, 4], sizes = [4, 128], strides = [1, 1]} : vector<4x132xbf16> to vector<4x128xbf16>
    %10 = tpu.concatenate %5, %6, %7, %8, %9 in 0 : vector<4x128xbf16>, vector<4x128xbf16>, vector<4x128xbf16>, vector<4x128xbf16>, vector<4x128xbf16> -> vector<20x128xbf16>
    %11 = vector.extract_strided_slice %0 {offsets = [1, 0, 0], sizes = [1, 4, 128], strides = [1, 1, 1]} : vector<2x4x128xbf16> to vector<1x4x128xbf16>
    %12 = vector.shape_cast %11 : vector<1x4x128xbf16> to vector<4x128xbf16>
    %13 = tpu.concatenate %1, %12, %1 in 1 : vector<4x2xbf16>, vector<4x128xbf16>, vector<4x2xbf16> -> vector<4x132xbf16>
    %14 = vector.extract_strided_slice %13 {offsets = [0, 0], sizes = [4, 128], strides = [1, 1]} : vector<4x132xbf16> to vector<4x128xbf16>
    %15 = vector.extract_strided_slice %13 {offsets = [0, 1], sizes = [4, 128], strides = [1, 1]} : vector<4x132xbf16> to vector<4x128xbf16>
    %16 = vector.extract_strided_slice %13 {offsets = [0, 2], sizes = [4, 128], strides = [1, 1]} : vector<4x132xbf16> to vector<4x128xbf16>
    %17 = vector.extract_strided_slice %13 {offsets = [0, 3], sizes = [4, 128], strides = [1, 1]} : vector<4x132xbf16> to vector<4x128xbf16>
    %18 = vector.extract_strided_slice %13 {offsets = [0, 4], sizes = [4, 128], strides = [1, 1]} : vector<4x132xbf16> to vector<4x128xbf16>
    %19 = tpu.concatenate %14, %15, %16, %17, %18 in 0 : vector<4x128xbf16>, vector<4x128xbf16>, vector<4x128xbf16>, vector<4x128xbf16>, vector<4x128xbf16> -> vector<20x128xbf16>
    %20 = tpu.concatenate %10, %19 in 1 : vector<20x128xbf16>, vector<20x128xbf16> -> vector<20x256xbf16>
    %c0_2 = arith.constant 0 : index
    %c0_3 = arith.constant 0 : index
    %21 = vector.load %arg2[%c0_2, %c0_3] : memref<8x20xbf16, #tpu.memory_space<vmem>>, vector<8x20xbf16>
    %cst_4 = arith.constant dense<0.000000e+00> : vector<8x256xf32>
    %22 = tpu.matmul %21, %20, %cst_4 {dimension_numbers = #tpu.dot_dimension_numbers<[1], [0], [0], [1], [0, 0, 1, 1], [], []>} : vector<8x20xbf16>, vector<20x256xbf16>, vector<8x256xf32> -> vector<8x256xf32>
    %cst_5 = arith.constant dense<0.000000e+00> : vector<8xf32>
    %23 = vector.multi_reduction <add>, %22, %cst_5 [1] : vector<8x256xf32> to vector<8xf32>
    %24 = arith.mulf %22, %22 : vector<8x256xf32>
    %cst_6 = arith.constant dense<0.000000e+00> : vector<8xf32>
    %25 = vector.multi_reduction <add>, %24, %cst_6 [1] : vector<8x256xf32> to vector<8xf32>
    %26 = arith.truncf %22 : vector<8x256xf32> to vector<8x256xbf16>
    %27 = vector.extract_strided_slice %26 {offsets = [0, 0], sizes = [8, 128], strides = [1, 1]} : vector<8x256xbf16> to vector<8x128xbf16>
    %c0_7 = arith.constant 0 : index
    %c0_8 = arith.constant 0 : index
    %c0_9 = arith.constant 0 : index
    %28 = vector.load %arg4[%c0_7, %c0_8, %c0_9] : memref<2x8x128xbf16, #tpu.memory_space<vmem>>, vector<1x8x128xbf16>
    %29 = vector.shape_cast %28 : vector<1x8x128xbf16> to vector<8x128xbf16>
    %30 = vector.shape_cast %27 : vector<8x128xbf16> to vector<1x8x128xbf16>
    tpu.vector_store %arg4[%c0_7, %c0_8, %c0_9], %30 {strides = array<i32>} : memref<2x8x128xbf16, #tpu.memory_space<vmem>>, vector<1x8x128xbf16>,
    %31 = vector.extract_strided_slice %26 {offsets = [0, 128], sizes = [8, 128], strides = [1, 1]} : vector<8x256xbf16> to vector<8x128xbf16>
    %c1 = arith.constant 1 : index
    %c0_10 = arith.constant 0 : index
    %c0_11 = arith.constant 0 : index
    %32 = vector.load %arg4[%c1, %c0_10, %c0_11] : memref<2x8x128xbf16, #tpu.memory_space<vmem>>, vector<1x8x128xbf16>
    %33 = vector.shape_cast %32 : vector<1x8x128xbf16> to vector<8x128xbf16>
    %34 = vector.shape_cast %31 : vector<8x128xbf16> to vector<1x8x128xbf16>
    tpu.vector_store %arg4[%c1, %c0_10, %c0_11], %34 {strides = array<i32>} : memref<2x8x128xbf16, #tpu.memory_space<vmem>>, vector<1x8x128xbf16>,
    %c0_12 = arith.constant 0 : index
    %c0_13 = arith.constant 0 : index
    %35 = vector.load %arg3[%c0_12, %c0_13] : memref<8x20xbf16, #tpu.memory_space<vmem>>, vector<8x20xbf16>
    %cst_14 = arith.constant dense<0.000000e+00> : vector<8x256xf32>
    %36 = tpu.matmul %35, %20, %cst_14 {dimension_numbers = #tpu.dot_dimension_numbers<[1], [0], [0], [1], [0, 0, 1, 1], [], []>} : vector<8x20xbf16>, vector<20x256xbf16>, vector<8x256xf32> -> vector<8x256xf32>
    %cst_15 = arith.constant dense<0.000000e+00> : vector<8xf32>
    %37 = vector.multi_reduction <add>, %36, %cst_15 [1] : vector<8x256xf32> to vector<8xf32>
    %38 = arith.mulf %36, %36 : vector<8x256xf32>
    %cst_16 = arith.constant dense<0.000000e+00> : vector<8xf32>
    %39 = vector.multi_reduction <add>, %38, %cst_16 [1] : vector<8x256xf32> to vector<8xf32>
    %40 = arith.truncf %36 : vector<8x256xf32> to vector<8x256xbf16>
    %41 = vector.extract_strided_slice %40 {offsets = [0, 0], sizes = [8, 128], strides = [1, 1]} : vector<8x256xbf16> to vector<8x128xbf16>
    %c0_17 = arith.constant 0 : index
    %c0_18 = arith.constant 0 : index
    %c0_19 = arith.constant 0 : index
    %42 = vector.load %arg5[%c0_17, %c0_18, %c0_19] : memref<2x8x128xbf16, #tpu.memory_space<vmem>>, vector<1x8x128xbf16>
    %43 = vector.shape_cast %42 : vector<1x8x128xbf16> to vector<8x128xbf16>
    %44 = vector.shape_cast %41 : vector<8x128xbf16> to vector<1x8x128xbf16>
    tpu.vector_store %arg5[%c0_17, %c0_18, %c0_19], %44 {strides = array<i32>} : memref<2x8x128xbf16, #tpu.memory_space<vmem>>, vector<1x8x128xbf16>,
    %45 = vector.extract_strided_slice %40 {offsets = [0, 128], sizes = [8, 128], strides = [1, 1]} : vector<8x256xbf16> to vector<8x128xbf16>
    %c1_20 = arith.constant 1 : index
    %c0_21 = arith.constant 0 : index
    %c0_22 = arith.constant 0 : index
    %46 = vector.load %arg5[%c1_20, %c0_21, %c0_22] : memref<2x8x128xbf16, #tpu.memory_space<vmem>>, vector<1x8x128xbf16>
    %47 = vector.shape_cast %46 : vector<1x8x128xbf16> to vector<8x128xbf16>
    %48 = vector.shape_cast %45 : vector<8x128xbf16> to vector<1x8x128xbf16>
    tpu.vector_store %arg5[%c1_20, %c0_21, %c0_22], %48 {strides = array<i32>} : memref<2x8x128xbf16, #tpu.memory_space<vmem>>, vector<1x8x128xbf16>,
    %49 = vector.shape_cast %23 : vector<8xf32> to vector<1x8xf32>
    %50 = vector.shape_cast %25 : vector<8xf32> to vector<1x8xf32>
    %51 = vector.shape_cast %37 : vector<8xf32> to vector<1x8xf32>
    %52 = vector.shape_cast %39 : vector<8xf32> to vector<1x8xf32>
    %53 = tpu.concatenate %49, %50, %51, %52 in 0 : vector<1x8xf32>, vector<1x8xf32>, vector<1x8xf32>, vector<1x8xf32> -> vector<4x8xf32>
    %c0_23 = arith.constant 0 : index
    %c0_24 = arith.constant 0 : index
    %c0_25 = arith.constant 0 : index
    %54 = vector.load %arg6[%c0_23, %c0_24, %c0_25] : memref<1x4x8xf32, #tpu.memory_space<vmem>>, vector<1x4x8xf32>
    %55 = vector.shape_cast %54 : vector<1x4x8xf32> to vector<4x8xf32>
    %56 = vector.shape_cast %53 : vector<4x8xf32> to vector<1x4x8xf32>
    tpu.vector_store %arg6[%c0_23, %c0_24, %c0_25], %56 {strides = array<i32>} : memref<1x4x8xf32, #tpu.memory_space<vmem>>, vector<1x4x8xf32>,
    return
  }
  func.func @transform_0(%arg0: i32) -> (i32, i32, i32) {
    %c0_i32 = arith.constant 0 : i32
    %c0_i32_0 = arith.constant 0 : i32
    %c0_i32_1 = arith.constant 0 : i32
    return %arg0, %c0_i32, %c0_i32_0 : i32, i32, i32
  }
  func.func @transform_1(%arg0: i32) -> (i32, i32) {
    %c0_i32 = arith.constant 0 : i32
    %c0_i32_0 = arith.constant 0 : i32
    %c0_i32_1 = arith.constant 0 : i32
    return %c0_i32, %c0_i32_0 : i32, i32
  }
  func.func @transform_2(%arg0: i32) -> (i32, i32) {
    %c0_i32 = arith.constant 0 : i32
    %c0_i32_0 = arith.constant 0 : i32
    %c0_i32_1 = arith.constant 0 : i32
    return %c0_i32, %c0_i32_0 : i32, i32
  }
  func.func @transform_3(%arg0: i32) -> (i32, i32, i32) {
    %c0_i32 = arith.constant 0 : i32
    %c0_i32_0 = arith.constant 0 : i32
    %c0_i32_1 = arith.constant 0 : i32
    return %arg0, %c0_i32, %c0_i32_0 : i32, i32, i32
  }
  func.func @transform_4(%arg0: i32) -> (i32, i32, i32) {
    %c0_i32 = arith.constant 0 : i32
    %c0_i32_0 = arith.constant 0 : i32
    %c0_i32_1 = arith.constant 0 : i32
    return %arg0, %c0_i32, %c0_i32_0 : i32, i32, i32
  }
  func.func @transform_5(%arg0: i32) -> (i32, i32, i32) {
    %c0_i32 = arith.constant 0 : i32
    %c0_i32_0 = arith.constant 0 : i32
    %c0_i32_1 = arith.constant 0 : i32
    return %arg0, %c0_i32, %c0_i32_0 : i32, i32, i32
  }
}

module attributes {stable_mosaic.version = 11 : i64} {
  func.func @_conv2_kernel(%arg0: i32, %arg1: memref<2x8x128xbf16, #tpu.memory_space<vmem>>, %arg2: memref<8x1xf32, #tpu.memory_space<vmem>>, %arg3: memref<8x1xf32, #tpu.memory_space<vmem>>, %arg4: memref<8x40xbf16, #tpu.memory_space<vmem>>, %arg5: memref<2x8x128xbf16, #tpu.memory_space<vmem>>, %arg6: memref<1x2x8xf32, #tpu.memory_space<vmem>>) attributes {dimension_semantics = [#tpu.dimension_semantics<parallel>], iteration_bounds = array<i64: 1>, scalar_prefetch = 0 : i64, scratch_operands = 0 : i64, tpu.core_type = #tpu.core_type<tc>, window_params = [{transform_indices = @transform_0, window_bounds = array<i64: 2, 8, 128>}, {pipeline_mode = #tpu.pipeline_mode<synchronous>, transform_indices = @transform_1, window_bounds = array<i64: 8, 1>}, {pipeline_mode = #tpu.pipeline_mode<synchronous>, transform_indices = @transform_2, window_bounds = array<i64: 8, 1>}, {pipeline_mode = #tpu.pipeline_mode<synchronous>, transform_indices = @transform_3, window_bounds = array<i64: 8, 40>}, {transform_indices = @transform_4, window_bounds = array<i64: 2, 8, 128>}, {transform_indices = @transform_5, window_bounds = array<i64: 1, 2, 8>}]} {
    %c0 = arith.constant 0 : index
    %c0_0 = arith.constant 0 : index
    %c0_1 = arith.constant 0 : index
    %0 = vector.load %arg1[%c0, %c0_0, %c0_1] : memref<2x8x128xbf16, #tpu.memory_space<vmem>>, vector<2x8x128xbf16>
    %1 = arith.extf %0 : vector<2x8x128xbf16> to vector<2x8x128xf32>
    %c0_2 = arith.constant 0 : index
    %c0_3 = arith.constant 0 : index
    %2 = vector.load %arg2[%c0_2, %c0_3] : memref<8x1xf32, #tpu.memory_space<vmem>>, vector<8x1xf32>
    %3 = vector.shape_cast %2 : vector<8x1xf32> to vector<1x8x1xf32>
    %4 = vector.broadcast %3 : vector<1x8x1xf32> to vector<2x8x128xf32>
    %5 = arith.mulf %1, %4 : vector<2x8x128xf32>
    %c0_4 = arith.constant 0 : index
    %c0_5 = arith.constant 0 : index
    %6 = vector.load %arg3[%c0_4, %c0_5] : memref<8x1xf32, #tpu.memory_space<vmem>>, vector<8x1xf32>
    %7 = vector.shape_cast %6 : vector<8x1xf32> to vector<1x8x1xf32>
    %8 = vector.broadcast %7 : vector<1x8x1xf32> to vector<2x8x128xf32>
    %9 = arith.addf %5, %8 : vector<2x8x128xf32>
    %cst = arith.constant 0.000000e+00 : f32
    %10 = vector.broadcast %cst : f32 to vector<2x8x128xf32>
    %11 = arith.maximumf %9, %10 : vector<2x8x128xf32>
    %12 = arith.truncf %11 : vector<2x8x128xf32> to vector<2x8x128xbf16>
    %cst_6 = arith.constant 0.000000e+00 : bf16
    %13 = vector.broadcast %cst_6 : bf16 to vector<8x2xbf16>
    %14 = vector.extract_strided_slice %12 {offsets = [0, 0, 0], sizes = [1, 8, 128], strides = [1, 1, 1]} : vector<2x8x128xbf16> to vector<1x8x128xbf16>
    %15 = vector.shape_cast %14 : vector<1x8x128xbf16> to vector<8x128xbf16>
    %16 = tpu.concatenate %13, %15, %13 in 1 : vector<8x2xbf16>, vector<8x128xbf16>, vector<8x2xbf16> -> vector<8x132xbf16>
    %17 = vector.extract_strided_slice %16 {offsets = [0, 0], sizes = [8, 128], strides = [1, 1]} : vector<8x132xbf16> to vector<8x128xbf16>
    %18 = vector.extract_strided_slice %16 {offsets = [0, 1], sizes = [8, 128], strides = [1, 1]} : vector<8x132xbf16> to vector<8x128xbf16>
    %19 = vector.extract_strided_slice %16 {offsets = [0, 2], sizes = [8, 128], strides = [1, 1]} : vector<8x132xbf16> to vector<8x128xbf16>
    %20 = vector.extract_strided_slice %16 {offsets = [0, 3], sizes = [8, 128], strides = [1, 1]} : vector<8x132xbf16> to vector<8x128xbf16>
    %21 = vector.extract_strided_slice %16 {offsets = [0, 4], sizes = [8, 128], strides = [1, 1]} : vector<8x132xbf16> to vector<8x128xbf16>
    %22 = tpu.concatenate %17, %18, %19, %20, %21 in 0 : vector<8x128xbf16>, vector<8x128xbf16>, vector<8x128xbf16>, vector<8x128xbf16>, vector<8x128xbf16> -> vector<40x128xbf16>
    %23 = vector.extract_strided_slice %12 {offsets = [1, 0, 0], sizes = [1, 8, 128], strides = [1, 1, 1]} : vector<2x8x128xbf16> to vector<1x8x128xbf16>
    %24 = vector.shape_cast %23 : vector<1x8x128xbf16> to vector<8x128xbf16>
    %25 = tpu.concatenate %13, %24, %13 in 1 : vector<8x2xbf16>, vector<8x128xbf16>, vector<8x2xbf16> -> vector<8x132xbf16>
    %26 = vector.extract_strided_slice %25 {offsets = [0, 0], sizes = [8, 128], strides = [1, 1]} : vector<8x132xbf16> to vector<8x128xbf16>
    %27 = vector.extract_strided_slice %25 {offsets = [0, 1], sizes = [8, 128], strides = [1, 1]} : vector<8x132xbf16> to vector<8x128xbf16>
    %28 = vector.extract_strided_slice %25 {offsets = [0, 2], sizes = [8, 128], strides = [1, 1]} : vector<8x132xbf16> to vector<8x128xbf16>
    %29 = vector.extract_strided_slice %25 {offsets = [0, 3], sizes = [8, 128], strides = [1, 1]} : vector<8x132xbf16> to vector<8x128xbf16>
    %30 = vector.extract_strided_slice %25 {offsets = [0, 4], sizes = [8, 128], strides = [1, 1]} : vector<8x132xbf16> to vector<8x128xbf16>
    %31 = tpu.concatenate %26, %27, %28, %29, %30 in 0 : vector<8x128xbf16>, vector<8x128xbf16>, vector<8x128xbf16>, vector<8x128xbf16>, vector<8x128xbf16> -> vector<40x128xbf16>
    %32 = tpu.concatenate %22, %31 in 1 : vector<40x128xbf16>, vector<40x128xbf16> -> vector<40x256xbf16>
    %c0_7 = arith.constant 0 : index
    %c0_8 = arith.constant 0 : index
    %33 = vector.load %arg4[%c0_7, %c0_8] : memref<8x40xbf16, #tpu.memory_space<vmem>>, vector<8x40xbf16>
    %cst_9 = arith.constant dense<0.000000e+00> : vector<8x256xf32>
    %34 = tpu.matmul %33, %32, %cst_9 {dimension_numbers = #tpu.dot_dimension_numbers<[1], [0], [0], [1], [0, 0, 1, 1], [], []>} : vector<8x40xbf16>, vector<40x256xbf16>, vector<8x256xf32> -> vector<8x256xf32>
    %cst_10 = arith.constant dense<0.000000e+00> : vector<8xf32>
    %35 = vector.multi_reduction <add>, %34, %cst_10 [1] : vector<8x256xf32> to vector<8xf32>
    %36 = arith.mulf %34, %34 : vector<8x256xf32>
    %cst_11 = arith.constant dense<0.000000e+00> : vector<8xf32>
    %37 = vector.multi_reduction <add>, %36, %cst_11 [1] : vector<8x256xf32> to vector<8xf32>
    %38 = arith.truncf %34 : vector<8x256xf32> to vector<8x256xbf16>
    %39 = vector.extract_strided_slice %38 {offsets = [0, 0], sizes = [8, 128], strides = [1, 1]} : vector<8x256xbf16> to vector<8x128xbf16>
    %c0_12 = arith.constant 0 : index
    %c0_13 = arith.constant 0 : index
    %c0_14 = arith.constant 0 : index
    %40 = vector.load %arg5[%c0_12, %c0_13, %c0_14] : memref<2x8x128xbf16, #tpu.memory_space<vmem>>, vector<1x8x128xbf16>
    %41 = vector.shape_cast %40 : vector<1x8x128xbf16> to vector<8x128xbf16>
    %42 = vector.shape_cast %39 : vector<8x128xbf16> to vector<1x8x128xbf16>
    tpu.vector_store %arg5[%c0_12, %c0_13, %c0_14], %42 {strides = array<i32>} : memref<2x8x128xbf16, #tpu.memory_space<vmem>>, vector<1x8x128xbf16>,
    %43 = vector.extract_strided_slice %38 {offsets = [0, 128], sizes = [8, 128], strides = [1, 1]} : vector<8x256xbf16> to vector<8x128xbf16>
    %c1 = arith.constant 1 : index
    %c0_15 = arith.constant 0 : index
    %c0_16 = arith.constant 0 : index
    %44 = vector.load %arg5[%c1, %c0_15, %c0_16] : memref<2x8x128xbf16, #tpu.memory_space<vmem>>, vector<1x8x128xbf16>
    %45 = vector.shape_cast %44 : vector<1x8x128xbf16> to vector<8x128xbf16>
    %46 = vector.shape_cast %43 : vector<8x128xbf16> to vector<1x8x128xbf16>
    tpu.vector_store %arg5[%c1, %c0_15, %c0_16], %46 {strides = array<i32>} : memref<2x8x128xbf16, #tpu.memory_space<vmem>>, vector<1x8x128xbf16>,
    %47 = vector.shape_cast %35 : vector<8xf32> to vector<1x8xf32>
    %48 = vector.shape_cast %37 : vector<8xf32> to vector<1x8xf32>
    %49 = tpu.concatenate %47, %48 in 0 : vector<1x8xf32>, vector<1x8xf32> -> vector<2x8xf32>
    %c0_17 = arith.constant 0 : index
    %c0_18 = arith.constant 0 : index
    %c0_19 = arith.constant 0 : index
    %50 = vector.load %arg6[%c0_17, %c0_18, %c0_19] : memref<1x2x8xf32, #tpu.memory_space<vmem>>, vector<1x2x8xf32>
    %51 = vector.shape_cast %50 : vector<1x2x8xf32> to vector<2x8xf32>
    %52 = vector.shape_cast %49 : vector<2x8xf32> to vector<1x2x8xf32>
    tpu.vector_store %arg6[%c0_17, %c0_18, %c0_19], %52 {strides = array<i32>} : memref<1x2x8xf32, #tpu.memory_space<vmem>>, vector<1x2x8xf32>,
    return
  }
  func.func @transform_0(%arg0: i32) -> (i32, i32, i32) {
    %c0_i32 = arith.constant 0 : i32
    %c0_i32_0 = arith.constant 0 : i32
    %c0_i32_1 = arith.constant 0 : i32
    return %arg0, %c0_i32, %c0_i32_0 : i32, i32, i32
  }
  func.func @transform_1(%arg0: i32) -> (i32, i32) {
    %c0_i32 = arith.constant 0 : i32
    %c0_i32_0 = arith.constant 0 : i32
    %c0_i32_1 = arith.constant 0 : i32
    return %c0_i32, %c0_i32_0 : i32, i32
  }
  func.func @transform_2(%arg0: i32) -> (i32, i32) {
    %c0_i32 = arith.constant 0 : i32
    %c0_i32_0 = arith.constant 0 : i32
    %c0_i32_1 = arith.constant 0 : i32
    return %c0_i32, %c0_i32_0 : i32, i32
  }
  func.func @transform_3(%arg0: i32) -> (i32, i32) {
    %c0_i32 = arith.constant 0 : i32
    %c0_i32_0 = arith.constant 0 : i32
    %c0_i32_1 = arith.constant 0 : i32
    return %c0_i32, %c0_i32_0 : i32, i32
  }
  func.func @transform_4(%arg0: i32) -> (i32, i32, i32) {
    %c0_i32 = arith.constant 0 : i32
    %c0_i32_0 = arith.constant 0 : i32
    %c0_i32_1 = arith.constant 0 : i32
    return %arg0, %c0_i32, %c0_i32_0 : i32, i32, i32
  }
  func.func @transform_5(%arg0: i32) -> (i32, i32, i32) {
    %c0_i32 = arith.constant 0 : i32
    %c0_i32_0 = arith.constant 0 : i32
    %c0_i32_1 = arith.constant 0 : i32
    return %arg0, %c0_i32, %c0_i32_0 : i32, i32, i32
  }
}

</mosaic_0001>

<bundles_post_ra>
// kernel: residual_block.5
= control target key start
LH: loop header
LB: loop body
LE: loop exit
PB: predicated region body
PF: predicated region fallthrough
CT: control target
= control target key end

     0   :  { %v122_v2 = vmov 0   ;;  %s182_s0 = inlined_call_operand.vmem [shape: bf16[2,8,128], index: 0, kind: input, shape index: {}]   ;;  %s183_s1 = inlined_call_operand.vmem [shape: bf16[2,8,128], index: 1, kind: input, shape index: {}]   ;;  %s184_s2 = inlined_call_operand.vmem [shape: f32[8,1], index: 2, kind: input, shape index: {}]   ;;  %s185_s3 = inlined_call_operand.vmem [shape: f32[8,1], index: 3, kind: input, shape index: {}]   ;;  %s186_s4 = inlined_call_operand.vmem [shape: f32[8,1], index: 4, kind: input, shape index: {}]   ;;  %s187_s5 = inlined_call_operand.vmem [shape: f32[8,1], index: 5, kind: input, shape index: {}]   ;;  %s188_s6 = inlined_call_operand.hbm [shape: f32[2,8,128], index: 6, kind: output, shape index: {}]  }
   0x1   :  { %v36_v0 = vld [vmem:[%s187_s5] sm:$0xff]  ;;  %99 = vset.pattern.permute.xlu1 %v122_v2  ;;  %98 = vset.pattern.permute.xlu0 %v122_v2 }
   0x2   :  { %v28_v1 = vld [vmem:[%s186_s4] sm:$0xff]  ;;  %39 = vperm.xlu1 %99, %v36_v0  }
   0x3   :  { %31 = vperm.xlu0 %98, %v28_v1  }
   0x4   :  { %11 = vsyncpa [#allocation3], 0  ;;  %v56_v3 = vld [vmem:[%s185_s3] sm:$0xff] }
   0x5   :  { %v48_v4 = vld [vmem:[%s184_s2] sm:$0xff] }
   0x6   :  { %59 = vperm.xlu1 %99, %v56_v3   ;;  %v87_v5 = vld [vmem:[%s183_s1] sm:$0xff]   ;;  %s123_s1 = smov [#allocation2]  }
   0x7   :  { %51 = vperm.xlu0 %98, %v48_v4   ;;  %v91_v6 = vld [vmem:[%s182_s0] sm:$0xff]   ;;  %v88_v7 = vunpack.c.l.bf16 %v87_v5  ;;  %v89_v8 = vunpack.c.h.bf16 %v87_v5  ;;  %s75_s2 = sshll.u32 %s123_s1, 4  ;;  %s76_s2 = int_to_ptr.vmem [resolvable:$true] %s75_s2 }
   0x8   :  { %v92_v11 = vunpack.c.l.bf16 %v91_v6  ;;  %v93_v12 = vunpack.c.h.bf16 %v91_v6  ;;  %s100_s0 = scalar_lea.vmem %s76_s2, 256  ;;  %p105_p1 = scmp.lt.s32.totalorder %s76_s2, %s76_s2 }
   0x9   :  { %p101_p0 = scmp.ne.s32.totalorder %s76_s2, %s100_s0  ;;  %p106_p2 = scmp.lt.s32.totalorder %s100_s0, %s100_s0 }
   0xb   :  { %p107_p3 = por %p106_p2, %p105_p1 }
   0xd   :  { %p108_p4 = pnand %p107_p3, %p101_p0 }
  0x7d   :  { %v40_v9 = vpop.permute.xlu1 %39 }
  0x7e   :  { %v32_v10 = vpop.permute.xlu0 %31 }
  0x7f   :  { %v34_v13 = vmul.f32 %v88_v7, %v32_v10  ;;  %v35_v14 = vmul.f32 %v89_v8, %v32_v10 }
  0x81   :  { %v60_v18 = vpop.permute.xlu1 %59  ;;  %v42_v19 = vadd.f32 %v40_v9, %v34_v13  ;;  %v43_v20 = vadd.f32 %v40_v9, %v35_v14 }
  0x82   :  { %v52_v15 = vpop.permute.xlu0 %51 }
  0x83   :  { %v54_v16 = vmul.f32 %v92_v11, %v52_v15  ;;  %v55_v17 = vmul.f32 %v93_v12, %v52_v15 }
  0x85   :  { %v62_v21 = vadd.f32 %v60_v18, %v54_v16  ;;  %v63_v22 = vadd.f32 %v60_v18, %v55_v17 }
  0x87   :  { %v64_v23 = vadd.f32 %v62_v21, %v42_v19  ;;  %v65_v24 = vadd.f32 %v63_v22, %v43_v20 }
  0x89   :  { %v66_v25 = vmax.f32 %v64_v23, 0.0  ;;  %v67_v26 = vmax.f32 %v65_v24, 0.0 }
  0x8b   :  { %68 = vst [vmem:[#allocation2] sm:$0xff] %v66_v25  ;;  %69 = vst [vmem:[#allocation2 + $0x8] sm:$0xff] %v67_v26 }
  0x8c   :  { %111 = shalt.err (!%p108_p4)
}
  0x8d   :  { %s124_s3 = smov 128   ;;  %s125_s7 = smov 8  }
  0x8e   :  { %81 = dma.vmem_to_hbm [thread:$0]  %s76_s2, 256, %s188_s6, [#allocation3], %s124_s3, %s124_s3, %s125_s7  }
  0x8f   :  { %120 = dma.done.wait [#allocation3], 256  }
  0x90   :  { %121 = vsyncadd [#allocation3], 4294967040 }
  0x91   :  { %85 = vsyncpa [#allocation3], 1 }

// kernel: residual_block.3
= control target key start
LH: loop header
LB: loop body
LE: loop exit
PB: predicated region body
PF: predicated region fallthrough
CT: control target
= control target key end

     0   :  { %s317_s20 = smov 2   ;;  %vm30_vm0 = vcmask 15360   ;;  %s318_s23 = smov 124   ;;  %v322_v18 = vmov 0   ;;  %vm65_vm1 = vcmask 1014784   ;;  %vm67_vm2 = vcmask 1041408   ;;  %s404_s0 = inlined_call_operand.vmem [shape: bf16[2,4,128], index: 0, kind: input, shape index: {}]   ;;  %s405_s1 = inlined_call_operand.vmem [shape: bf16[8,20], index: 1, kind: input, shape index: {}]   ;;  %s406_s2 = inlined_call_operand.vmem [shape: bf16[8,20], index: 2, kind: input, shape index: {}]   ;;  %s407_s3 = inlined_call_operand.vmem [shape: bf16[2,8,128], index: 3, kind: output, shape index: {0}]   ;;  %s408_s4 = inlined_call_operand.vmem [shape: bf16[2,8,128], index: 4, kind: output, shape index: {1}]   ;;  %s409_s5 = inlined_call_operand.vmem [shape: f32[1,4,8], index: 5, kind: output, shape index: {2}]  }
   0x1   :  { %v294_v0 = vld.sshfl [vmem:[%s404_s0 + $0x2] sm:$0x3 pattern:$0x76325410]  ;;  %s319_s24 = smov 127   ;;  %s321_s25 = smov 125   ;;  %168 = vmatprep.mubr.bf16.mxu0 %v322_v18  ;;  %226 = vmatprep.mubr.bf16.mxu1 %v322_v18 }
   0x2   :  { %85 = vrot.lane.b32.xlu0 %v294_v0, %s317_s20  ;;  %v293_v1 = vld.sshfl [vmem:[%s404_s0] sm:$0x3 pattern:$0x76325410]  ;;  %s320_s0 = smov 126   ;;  %vm43_vm3 = vcmask 1039360  }
   0x3   :  { %vm51_vm4 = vcmask 1031168   ;;  %vm59_vm5 = vcmask 1022976   ;;  %vm70_vm6 = vcmask 1043456   ;;  %vm73_vm7 = vcmask 1045504   ;;  %v125_v52 = vld [vmem:[%s405_s1] sm:$0xf] }
   0x4   :  { %vm126_vm8 = vcmask 162816   ;;  %v190_v53 = vld [vmem:[%s406_s2] sm:$0xf]  ;;  %vm274_vm9 = vcmask 1040384   ;;  %vm277_vm10 = vcmask 1042432   ;;  %vm279_vm11 = vcmask 60416  }
   0x6   :  { %28 = vrot.lane.b32.xlu0 %v293_v1, %s317_s20 }
  0x74   :  { %v86_v2 = vpop.permute.xlu0 %85 }
  0x75   :  { %v360_v3 = vsel %vm30_vm0, 0, %v86_v2  ;;  %v89_v10 = vsel %vm30_vm0, %v86_v2, 0 }
  0x76   :  { %113 = vrot.lane.b32.xlu0 %v360_v3, %s318_s23  ;;  %v92_v5 = vrot.slane %v360_v3, 6  ;;  %v99_v9 = vrot.slane %v360_v3, 4  ;;  %v93_v11 = vrot.slane %v89_v10, 6  ;;  %v106_v14 = vrot.slane %v360_v3, 2 }
  0x77   :  { %v100_v15 = vrot.slane %v89_v10, 4  ;;  %v107_v19 = vrot.slane %v89_v10, 2 }
  0x78   :  { %v29_v4 = vpop.permute.xlu0 %28 }
  0x79   :  { %v365_v6 = vsel %vm30_vm0, 0, %v29_v4  ;;  %v34_v8 = vsel %vm30_vm0, %v29_v4, 0 }
  0x7a   :  { %94 = vrot.lane.b32.xlu0 %v92_v5, %s319_s24  ;;  %61 = vrot.lane.b32.xlu1 %v365_v6, %s318_s23  ;;  %v37_v7 = vrot.slane %v365_v6, 6  ;;  %v45_v12 = vrot.slane %v365_v6, 4  ;;  %v38_v13 = vrot.slane %v34_v8, 6  ;;  %v53_v16 = vrot.slane %v365_v6, 2 }
  0x7b   :  { %v46_v17 = vrot.slane %v34_v8, 4  ;;  %v54_v20 = vrot.slane %v34_v8, 2 }
  0x7e   :  { %63 = vrot.lane.b32.xlu1 %v34_v8, %s318_s23  ;;  %39 = vrot.lane.b32.xlu0 %v37_v7, %s319_s24  ;;  %v249_v8 = vlaneseq }
  0x82   :  { %115 = vrot.lane.b32.xlu1 %v89_v10, %s318_s23  ;;  %101 = vrot.lane.b32.xlu0 %v99_v9, %s320_s0  ;;  %v250_v9 = vand.u32 127, %v249_v8  ;;  %v252_v10 = vshrl.u32 %v249_v8, 7 }
  0x86   :  { %96 = vrot.lane.b32.xlu1 %v93_v11, %s319_s24  ;;  %47 = vrot.lane.b32.xlu0 %v45_v12, %s320_s0  ;;  %v253_v12 = vsub.s32 %v250_v9, %v252_v10 }
  0x8a   :  { %41 = vrot.lane.b32.xlu1 %v38_v13, %s319_s24  ;;  %108 = vrot.lane.b32.xlu0 %v106_v14, %s321_s25 }
  0x8e   :  { %103 = vrot.lane.b32.xlu1 %v100_v15, %s320_s0  ;;  %55 = vrot.lane.b32.xlu0 %v53_v16, %s321_s25 }
  0x92   :  { %49 = vrot.lane.b32.xlu1 %v46_v17, %s320_s0 }
  0x96   :  { %110 = vrot.lane.b32.xlu1 %v107_v19, %s321_s25 }
  0x9a   :  { %57 = vrot.lane.b32.xlu1 %v54_v20, %s321_s25 }
  0xe8   :  { %v114_v21 = vpop.permute.xlu0 %113 }
  0xec   :  { %v62_v22 = vpop.permute.xlu1 %61  ;;  %v95_v23 = vpop.permute.xlu0 %94 }
  0xf0   :  { %v64_v24 = vpop.permute.xlu1 %63  ;;  %v40_v26 = vpop.permute.xlu0 %39 }
  0xf1   :  { %v66_v25 = vsel %vm65_vm1, %v62_v22, %v64_v24 }
  0xf2   :  { %v131_v29 = vsel %vm67_vm2, %v66_v25, 0 }
  0xf4   :  { %v116_v27 = vpop.permute.xlu1 %115  ;;  %v102_v31 = vpop.permute.xlu0 %101 }
  0xf5   :  { %v117_v28 = vsel %vm65_vm1, %v114_v21, %v116_v27 }
  0xf6   :  { %295 = vmatprep.subr.msk.bf16.mxu0 %vm67_vm2, %v117_v28  ;;  %298 = vmatprep.subr.msk.bf16.mxu1 %vm67_vm2, %v117_v28 }
  0xf7   :  { %149 = vmatpush1.bf16.msra.mxu0 %v131_v29  ;;  %207 = vmatpush1.bf16.msra.mxu1 %v131_v29 }
  0xf8   :  { %v97_v30 = vpop.permute.xlu1 %96  ;;  %v48_v33 = vpop.permute.xlu0 %47 }
  0xf9   :  { %v98_v36 = vsel %vm43_vm3, %v95_v23, %v97_v30 }
  0xfa   :  { %v119_v39 = vsel %vm67_vm2, %v360_v3, %v98_v36 }
  0xfc   :  { %v42_v32 = vpop.permute.xlu1 %41  ;;  %v109_v37 = vpop.permute.xlu0 %108 }
  0xfd   :  { %v44_v41 = vsel %vm43_vm3, %v40_v26, %v42_v32 }
  0xfe   :  { %v69_v46 = vsel %vm67_vm2, %v365_v6, %v44_v41 }
 0x100   :  { %v104_v34 = vpop.permute.xlu1 %103  ;;  %v56_v47 = vpop.permute.xlu0 %55 }
 0x101   :  { %v105_v38 = vsel %vm51_vm4, %v102_v31, %v104_v34 }
 0x102   :  { %v121_v43 = vsel %vm70_vm6, %v119_v39, %v105_v38 }
 0x104   :  { %v50_v35 = vpop.permute.xlu1 %49 }
 0x105   :  { %v52_v44 = vsel %vm51_vm4, %v48_v33, %v50_v35 }
 0x106   :  { %v72_v50 = vsel %vm70_vm6, %v69_v46, %v52_v44 }
 0x108   :  { %v111_v40 = vpop.permute.xlu1 %110 }
 0x109   :  { %v112_v42 = vsel %vm59_vm5, %v109_v37, %v111_v40 }
 0x10a   :  { %v123_v45 = vsel %vm73_vm7, %v121_v43, %v112_v42 }
 0x10b   :  { %150 = vmatprep.subr.bf16.mxu0 %v123_v45  ;;  %208 = vmatprep.subr.bf16.mxu1 %v123_v45 }
 0x10c   :  { %v58_v48 = vpop.permute.xlu1 %57 }
 0x10d   :  { %v60_v49 = vsel %vm59_vm5, %v56_v47, %v58_v48 }
 0x10e   :  { %v75_v51 = vsel %vm73_vm7, %v72_v50, %v60_v49 }
 0x10f   :  { %151 = vmatpush1.bf16.msra.mxu0 %v75_v51  ;;  %209 = vmatpush1.bf16.msra.mxu1 %v75_v51 }
 0x112   :  { %296 = vmatmul.mubr.msk.bf16.vlgmr.msra.gmra.mxu0 %vm126_vm8, %v125_v52  ;;  %299 = vmatmul.mubr.msk.bf16.vlgmr.msra.gmra.mxu1 %vm126_vm8, %v190_v53 }
 0x1d2   :  { %v170_v54 = vpop.f32.mrf.mxu0  ;;  %v228_v55 = vpop.f32.mrf.mxu1 }
 0x1d3   :  { %v180_v58 = vmul.f32 %v170_v54, %v170_v54  ;;  %v238_v5 = vmul.f32 %v228_v55, %v228_v55 }
 0x1d4   :  { %v172_v56 = vpop.f32.mrf.mxu0  ;;  %v230_v57 = vpop.f32.mrf.mxu1 }
 0x1d5   :  { %v304_v59 = vpack.c.bf16 %v172_v56, %v170_v54  ;;  %v309_v60 = vpack.c.bf16 %v230_v57, %v228_v55  ;;  %v177_v61 = vadd.f32 %v172_v56, %v170_v54  ;;  %v181_v62 = vmul.f32 %v172_v56, %v172_v56 }
 0x1d6   :  { %v174_v63 = vpop.f32.mrf.mxu0  ;;  %v232_v0 = vpop.f32.mrf.mxu1  ;;  %v235_v4 = vadd.f32 %v230_v57, %v228_v55  ;;  %v239_v6 = vmul.f32 %v230_v57, %v230_v57 }
 0x1d7   :  { %305 = vst [vmem:[%s407_s3] sm:$0xff] %v304_v59   ;;  %310 = vst [vmem:[%s408_s4] sm:$0xff] %v309_v60   ;;  %178 = vadd.xlane.f32.xlu0 %v177_v61  ;;  %v182_v1 = vadd.f32 %v181_v62, %v180_v58 }
 0x1d8   :  { %v175_v2 = vpop.f32.mrf.mxu0  ;;  %v233_v3 = vpop.f32.mrf.mxu1  ;;  %v240_v7 = vadd.f32 %v239_v6, %v238_v5 }
 0x1d9   :  { %183 = vadd.xlane.f32.xlu1 %v182_v1 }
 0x1db   :  { %236 = vadd.xlane.f32.xlu0 %v235_v4 }
 0x1df   :  { %241 = vadd.xlane.f32.xlu0 %v240_v7 }
 0x260   :  { %v179_v11 = vpop.xlane.xlu0 %178 }
 0x261   :  { %v254_v16 = vrot.slane %v179_v11, %v253_v12 }
 0x262   :  { %v184_v13 = vpop.xlane.xlu1 %183 }
 0x263   :  { %v260_v14 = vrot.slane %v184_v13, %v253_v12 }
 0x264   :  { %v237_v15 = vpop.xlane.xlu0 %236 }
 0x265   :  { %v266_v17 = vrot.slane %v237_v15, %v253_v12  ;;  %v275_v18 = vsel %vm274_vm9, %v254_v16, %v260_v14 }
 0x267   :  { %v276_v21 = vsel %vm67_vm2, %v275_v18, %v266_v17 }
 0x268   :  { %v242_v19 = vpop.xlane.xlu0 %241 }
 0x269   :  { %v272_v20 = vrot.slane %v242_v19, %v253_v12 }
 0x26b   :  { %v278_v22 = vsel %vm277_vm10, %v276_v21, %v272_v20 }
 0x26c   :  { %280 = vst.msk [vmem:[%s409_s5] sm:$0xf] %vm279_vm11, %v278_v22 }

// kernel: residual_block.4
= control target key start
LH: loop header
LB: loop body
LE: loop exit
PB: predicated region body
PF: predicated region fallthrough
CT: control target
= control target key end

     0   :  { %v235_v0 = vmov 0   ;;  %vm47_vm0 = vcmask 15360   ;;  %s239_s24 = smov 125   ;;  %s240_s25 = smov 127   ;;  %vm78_vm1 = vcmask 1014784   ;;  %vm80_vm2 = vcmask 1043456   ;;  %s301_s1 = inlined_call_operand.vmem [shape: f32[8,1], index: 1, kind: input, shape index: {}]   ;;  %s302_s2 = inlined_call_operand.vmem [shape: f32[8,1], index: 2, kind: input, shape index: {}]   ;;  %s303_s0 = inlined_call_operand.vmem [shape: bf16[2,8,128], index: 0, kind: input, shape index: {}]   ;;  %s304_s3 = inlined_call_operand.vmem [shape: bf16[8,40], index: 3, kind: input, shape index: {}]   ;;  %s305_s4 = inlined_call_operand.vmem [shape: bf16[2,8,128], index: 4, kind: output, shape index: {0}]   ;;  %s306_s5 = inlined_call_operand.vmem [shape: f32[1,2,8], index: 5, kind: output, shape index: {1}]  }
   0x1   :  { %234 = vset.pattern.permute.xlu0 %v235_v0  ;;  %v24_v1 = vld [vmem:[%s301_s1] sm:$0xff]  ;;  %168 = vmatprep.mubr.bf16.mxu0 %v235_v0  ;;  %s236_s1 = smov 2   ;;  %vm66_vm3 = vcmask 1031168   ;;  %vm72_vm4 = vcmask 1022976   ;;  %vm60_vm5 = vcmask 1039360   ;;  %vm126_vm6 = vcmask 326656  }
   0x2   :  { %27 = vperm.xlu0 %234, %v24_v1   ;;  %v32_v2 = vld [vmem:[%s302_s2] sm:$0xff]  ;;  %s238_s2 = smov 126   ;;  %v191_v1 = vlaneseq  ;;  %vm204_vm7 = vcmask 1040384   ;;  %vm206_vm8 = vcmask 58368  }
   0x3   :  { %v220_v3 = vld [vmem:[%s303_s0] sm:$0xff]   ;;  %s237_s0 = smov 124  }
   0x4   :  { %v221_v4 = vunpack.c.l.bf16 %v220_v3  ;;  %v222_v5 = vunpack.c.h.bf16 %v220_v3  ;;  %v125_v55 = vld [vmem:[%s304_s3] sm:$0xf]  ;;  %v194_v3 = vshrl.u32 %v191_v1, 7 }
   0x6   :  { %35 = vperm.xlu0 %234, %v32_v2   ;;  %v192_v2 = vand.u32 127, %v191_v1 }
  0x7d   :  { %v28_v6 = vpop.permute.xlu0 %27 }
  0x7e   :  { %v30_v7 = vmul.f32 %v221_v4, %v28_v6  ;;  %v31_v8 = vmul.f32 %v222_v5, %v28_v6  ;;  %v195_v4 = vsub.s32 %v192_v2, %v194_v3 }
  0x81   :  { %v36_v9 = vpop.permute.xlu0 %35 }
  0x82   :  { %v38_v10 = vadd.f32 %v36_v9, %v30_v7  ;;  %v39_v11 = vadd.f32 %v36_v9, %v31_v8 }
  0x84   :  { %v40_v12 = vmax.f32 %v38_v10, 0.0  ;;  %v41_v13 = vmax.f32 %v39_v11, 0.0 }
  0x86   :  { %v42_v14 = vpack.c.bf16 %v40_v12, %v40_v12  ;;  %v43_v15 = vpack.c.bf16 %v41_v13, %v41_v13 }
  0x88   :  { %45 = vrot.lane.b32.xlu1 %v42_v14, %s236_s1 }
  0x8c   :  { %89 = vrot.lane.b32.xlu1 %v43_v15, %s236_s1 }
  0xfa   :  { %v46_v16 = vpop.permute.xlu1 %45 }
  0xfb   :  { %v280_v17 = vsel %vm47_vm0, 0, %v46_v16  ;;  %v51_v18 = vsel %vm47_vm0, %v46_v16, 0 }
  0xfc   :  { %76 = vrot.lane.b32.xlu1 %v51_v18, %s237_s0  ;;  %74 = vrot.lane.b32.xlu0 %v280_v17, %s237_s0  ;;  %v55_v24 = vrot.slane %v51_v18, 4  ;;  %v54_v25 = vrot.slane %v280_v17, 4 }
  0xfe   :  { %v90_v19 = vpop.permute.xlu1 %89 }
  0xff   :  { %v92_v20 = vsel %vm47_vm0, 0, %v90_v19  ;;  %v93_v21 = vsel %vm47_vm0, %v90_v19, 0 }
 0x100   :  { %115 = vrot.lane.b32.xlu1 %v93_v21, %s237_s0  ;;  %113 = vrot.lane.b32.xlu0 %v92_v20, %s237_s0  ;;  %v97_v22 = vrot.slane %v93_v21, 4  ;;  %v96_v23 = vrot.slane %v92_v20, 4 }
 0x104   :  { %105 = vrot.lane.b32.xlu1 %v93_v21, %s238_s2  ;;  %103 = vrot.lane.b32.xlu0 %v92_v20, %s238_s2 }
 0x108   :  { %64 = vrot.lane.b32.xlu1 %v51_v18, %s238_s2  ;;  %62 = vrot.lane.b32.xlu0 %v280_v17, %s238_s2 }
 0x10c   :  { %110 = vrot.lane.b32.xlu1 %v97_v22, %s239_s24  ;;  %108 = vrot.lane.b32.xlu0 %v96_v23, %s239_s24 }
 0x110   :  { %70 = vrot.lane.b32.xlu1 %v55_v24, %s239_s24  ;;  %68 = vrot.lane.b32.xlu0 %v54_v25, %s239_s24 }
 0x114   :  { %100 = vrot.lane.b32.xlu1 %v97_v22, %s240_s25  ;;  %98 = vrot.lane.b32.xlu0 %v96_v23, %s240_s25 }
 0x118   :  { %58 = vrot.lane.b32.xlu1 %v55_v24, %s240_s25  ;;  %56 = vrot.lane.b32.xlu0 %v54_v25, %s240_s25 }
 0x16e   :  { %v75_v26 = vpop.permute.xlu0 %74  ;;  %v77_v27 = vpop.permute.xlu1 %76 }
 0x16f   :  { %v79_v28 = vsel %vm78_vm1, %v75_v26, %v77_v27 }
 0x170   :  { %v131_v32 = vsel %vm80_vm2, %v79_v28, 0 }
 0x172   :  { %v114_v29 = vpop.permute.xlu0 %113  ;;  %v116_v30 = vpop.permute.xlu1 %115 }
 0x173   :  { %v117_v31 = vsel %vm78_vm1, %v114_v29, %v116_v30 }
 0x174   :  { %216 = vmatprep.subr.msk.bf16.mxu0 %vm80_vm2, %v117_v31 }
 0x175   :  { %147 = vmatpush1.bf16.msra.mxu0 %v131_v32 }
 0x176   :  { %v104_v33 = vpop.permute.xlu0 %103  ;;  %v106_v34 = vpop.permute.xlu1 %105 }
 0x177   :  { %v107_v39 = vsel %vm66_vm3, %v104_v33, %v106_v34 }
 0x17a   :  { %v63_v35 = vpop.permute.xlu0 %62  ;;  %v65_v36 = vpop.permute.xlu1 %64 }
 0x17b   :  { %v67_v44 = vsel %vm66_vm3, %v63_v35, %v65_v36 }
 0x17e   :  { %v109_v37 = vpop.permute.xlu0 %108  ;;  %v111_v38 = vpop.permute.xlu1 %110 }
 0x17f   :  { %v112_v40 = vsel %vm72_vm4, %v109_v37, %v111_v38 }
 0x180   :  { %v123_v41 = vsel %vm80_vm2, %v107_v39, %v112_v40 }
 0x181   :  { %148 = vmatprep.subr.bf16.mxu0 %v123_v41 }
 0x182   :  { %v69_v42 = vpop.permute.xlu0 %68  ;;  %v71_v43 = vpop.permute.xlu1 %70 }
 0x183   :  { %v73_v45 = vsel %vm72_vm4, %v69_v42, %v71_v43 }
 0x184   :  { %v86_v46 = vsel %vm80_vm2, %v67_v44, %v73_v45 }
 0x185   :  { %149 = vmatpush1.bf16.msra.mxu0 %v86_v46 }
 0x186   :  { %v99_v47 = vpop.permute.xlu0 %98  ;;  %v101_v48 = vpop.permute.xlu1 %100 }
 0x187   :  { %v102_v49 = vsel %vm60_vm5, %v99_v47, %v101_v48 }
 0x188   :  { %v119_v50 = vsel %vm80_vm2, %v92_v20, %v102_v49 }
 0x189   :  { %150 = vmatprep.subr.bf16.mxu0 %v119_v50 }
 0x18a   :  { %v57_v51 = vpop.permute.xlu0 %56  ;;  %v59_v52 = vpop.permute.xlu1 %58 }
 0x18b   :  { %v61_v53 = vsel %vm60_vm5, %v57_v51, %v59_v52 }
 0x18c   :  { %v82_v54 = vsel %vm80_vm2, %v280_v17, %v61_v53 }
 0x18d   :  { %151 = vmatpush1.bf16.msra.mxu0 %v82_v54 }
 0x190   :  { %217 = vmatmul.mubr.msk.bf16.vlgmr.msra.gmra.mxu0 %vm126_vm6, %v125_v55 }
 0x250   :  { %v170_v56 = vpop.f32.mrf.mxu0 }
 0x251   :  { %v180_v60 = vmul.f32 %v170_v56, %v170_v56 }
 0x252   :  { %v172_v57 = vpop.f32.mrf.mxu0 }
 0x253   :  { %v226_v58 = vpack.c.bf16 %v172_v57, %v170_v56  ;;  %v177_v59 = vadd.f32 %v172_v57, %v170_v56  ;;  %v181_v61 = vmul.f32 %v172_v57, %v172_v57 }
 0x254   :  { %v174_v62 = vpop.f32.mrf.mxu0 }
 0x255   :  { %227 = vst [vmem:[%s305_s4] sm:$0xff] %v226_v58   ;;  %178 = vadd.xlane.f32.xlu0 %v177_v59  ;;  %v182_v63 = vadd.f32 %v181_v61, %v180_v60 }
 0x256   :  { %v175_v0 = vpop.f32.mrf.mxu0 }
 0x257   :  { %183 = vadd.xlane.f32.xlu1 %v182_v63 }
 0x2de   :  { %v179_v5 = vpop.xlane.xlu0 %178 }
 0x2df   :  { %v196_v7 = vrot.slane %v179_v5, %v195_v4 }
 0x2e0   :  { %v184_v6 = vpop.xlane.xlu1 %183 }
 0x2e1   :  { %v202_v8 = vrot.slane %v184_v6, %v195_v4 }
 0x2e3   :  { %v205_v9 = vsel %vm204_vm7, %v196_v7, %v202_v8 }
 0x2e4   :  { %207 = vst.msk [vmem:[%s306_s5] sm:$0x3] %vm206_vm8, %v205_v9 }

</bundles_post_ra>
